<compile_context>
chip_gen: v5e
topology: v5e:2x2
jax: 0.10.0
libtpu: 0.0.40
codegen_flags: <defaults>
</compile_context>

<pallas_src>
import functools

import jax
import jax.numpy as jnp
from jax import lax
from jax.experimental import pallas as pl
from jax.experimental.pallas import tpu as pltpu


def _round_up(x, m):
    return ((x + m - 1) // m) * m


def _conv_prelu_kernel(xr_ref, xs_ref, w01_ref, w2_ref, b_ref, alpha_ref, o_ref):
    # xr_ref:    (TL, 2*C_in)        VMEM  (phase-0 view tile, taps k=0,1)
    # xs_ref:    (TL, 2*C_in)        VMEM  (phase-1 view tile, tap  k=2)
    # w01_ref:   (2*C_in, C_out_pad) VMEM  (resident)
    # w2_ref:    (2*C_in, C_out_pad) VMEM  (resident)
    # b_ref:     (1, C_out_pad)      VMEM  (resident, f32)
    # alpha_ref: (1, 1)              SMEM  (PReLU single shared parameter)
    acc = jnp.dot(xr_ref[...], w01_ref[...], preferred_element_type=jnp.float32)
    acc = acc + jnp.dot(xs_ref[...], w2_ref[...], preferred_element_type=jnp.float32)
    acc = acc + b_ref[...]                      # broadcast bias over rows (f32)
    alpha = alpha_ref[0, 0]
    out = jnp.where(acc > 0, acc, alpha * acc)  # PReLU epilogue in f32
    o_ref[...] = out.astype(o_ref.dtype)


def downsample_layer(x, weight, bias, alpha, *, kernel_size=3, stride=2, padding=1,
                     compute_dtype=jnp.bfloat16, tile_rows=512):
    """x: (B, L, C_in).  weight: (C_out, C_in, K) torch Conv1d layout.
    bias: (C_out,), alpha: scalar PReLU weight.  Returns (B, L_out, C_out) f32."""
    assert kernel_size == 3 and stride == 2 and padding == 1, \
        "kernel specialized to the DownsampleLayer defaults (k=3, s=2, p=1)"
    B, L, C_in = x.shape
    C_out, w_cin, K = weight.shape
    assert w_cin == C_in and K == kernel_size
    L_out = (L + 2 * padding - kernel_size) // stride + 1

    # ---- tiling ------------------------------------------------------------
    TL = min(tile_rows, _round_up(L_out, 8))
    TL = _round_up(TL, 8)                       # sublane-aligned row tile
    L_out_pad = _round_up(L_out, TL)
    num_tiles = L_out_pad // TL
    C_out_pad = _round_up(C_out, 128)           # lane-dense output stores
    two_c = 2 * C_in

    # ---- two free phase views of x (no K*C_in im2col in HBM) ---------------
    xc = x.astype(compute_dtype)
    # phase 0: xr[b, t] = [x_pad[2t], x_pad[2t+1]]  with one left zero (conv pad)
    Lp1 = max(2 * L_out_pad, _round_up(L + 1, 2))
    x_pad1 = jnp.pad(xc, ((0, 0), (1, Lp1 - 1 - L), (0, 0)))
    xr = x_pad1.reshape(B, Lp1 // 2, two_c)
    # phase 1: xs[b, t] = [x[2t], x[2t+1]]  (right zeros cover the conv right pad)
    LpR = max(2 * L_out_pad, _round_up(L, 2))
    x_padR = jnp.pad(xc, ((0, 0), (0, LpR - L), (0, 0)))
    xs = x_padR.reshape(B, LpR // 2, two_c)

    # ---- weights: rows stacked to match the phase-view lane layout ----------
    w_t = jnp.transpose(weight, (2, 1, 0))                       # (K, C_in, C_out)
    w01 = jnp.concatenate([w_t[0], w_t[1]], axis=0)              # (2*C_in, C_out)
    w2p = jnp.concatenate([jnp.zeros_like(w_t[2]), w_t[2]], 0)   # (2*C_in, C_out)
    pad_c = ((0, 0), (0, C_out_pad - C_out))
    w01 = jnp.pad(w01, pad_c).astype(compute_dtype)
    w2p = jnp.pad(w2p, pad_c).astype(compute_dtype)
    bias2d = jnp.pad(bias.reshape(1, C_out).astype(jnp.float32), pad_c)
    alpha2d = jnp.asarray(alpha, jnp.float32).reshape(1, 1)

    # ---- gridded, pipelined Pallas call -------------------------------------
    in_bytes = jnp.dtype(compute_dtype).itemsize
    flops = 2 * 2 * B * L_out_pad * two_c * C_out_pad
    bytes_accessed = ((xr.size + xs.size) * in_bytes
                      + (w01.size + w2p.size) * in_bytes
                      + B * L_out_pad * C_out_pad * 4)

    out = pl.pallas_call(
        _conv_prelu_kernel,
        out_shape=jax.ShapeDtypeStruct((B, L_out_pad, C_out_pad), jnp.float32),
        grid=(B, num_tiles),
        in_specs=[
            pl.BlockSpec((None, TL, two_c), lambda b, i: (b, i, 0)),      # xr tile
            pl.BlockSpec((None, TL, two_c), lambda b, i: (b, i, 0)),      # xs tile
            pl.BlockSpec((two_c, C_out_pad), lambda b, i: (0, 0)),        # W01 (resident)
            pl.BlockSpec((two_c, C_out_pad), lambda b, i: (0, 0)),        # W2  (resident)
            pl.BlockSpec((1, C_out_pad), lambda b, i: (0, 0)),            # bias (resident)
            pl.BlockSpec((1, 1), lambda b, i: (0, 0),
                         memory_space=pltpu.MemorySpace.SMEM),            # PReLU alpha
        ],
        out_specs=pl.BlockSpec((None, TL, C_out_pad), lambda b, i: (b, i, 0)),
        compiler_params=pltpu.CompilerParams(
            dimension_semantics=("parallel", "parallel"),
            vmem_limit_bytes=32 * 1024 * 1024),
        cost_estimate=pl.CostEstimate(flops=flops, transcendentals=0,
                                      bytes_accessed=bytes_accessed),
    )(xr, xs, w01, w2p, bias2d, alpha2d)

    return out[:, :L_out, :C_out]


def _reference(x, weight, bias, alpha, *, stride=2, padding=1):
    # Pure-JAX reference mirroring the PyTorch forward exactly (full f32).
    x_ncl = jnp.transpose(x, (0, 2, 1))                              # (B, C_in, L)
    y = lax.conv_general_dilated(
        x_ncl, weight, window_strides=(stride,), padding=[(padding, padding)],
        dimension_numbers=("NCH", "OIH", "NCH"), precision=lax.Precision.HIGHEST)
    y = y + bias[None, :, None]
    y = jnp.where(y > 0, y, alpha * y)                               # PReLU
    return jnp.transpose(y, (0, 2, 1))                               # (B, L_out, C_out)


if __name__ == "__main__":
    key = jax.random.PRNGKey(0)
    B, L, C_in, C_out, K = 2, 16, 4, 8, 3

    kx, kw, kb = jax.random.split(key, 3)
    x = jax.random.normal(kx, (B, L, C_in), dtype=jnp.float32)

    fan_in = C_in * K
    bound = 1.0 / (fan_in ** 0.5)
    weight = jax.random.uniform(kw, (C_out, C_in, K), jnp.float32, -bound, bound)
    bias = jax.random.uniform(kb, (C_out,), jnp.float32, -bound, bound)
    alpha = jnp.float32(0.25)

    y_ref = _reference(x, weight, bias, alpha)
    L_out = (L + 2 * 1 - K) // 2 + 1

    # f32 compute path: tight check against the conv reference.
    f32_fn = jax.jit(functools.partial(downsample_layer, compute_dtype=jnp.float32))
    y32 = jax.block_until_ready(f32_fn(x, weight, bias, alpha))
    assert y32.shape == (B, L_out, C_out)
    assert jnp.allclose(y32, y_ref, rtol=1e-3, atol=1e-3), "f32 path mismatch vs reference"

    # bf16 MXU path (default / optimized): f32 accumulation, looser tolerance.
    bf16_fn = jax.jit(functools.partial(downsample_layer, compute_dtype=jnp.bfloat16))
    ybf = jax.block_until_ready(bf16_fn(x, weight, bias, alpha))
    assert ybf.shape == (B, L_out, C_out)
    assert jnp.allclose(ybf, y_ref, rtol=5e-2, atol=5e-2), "bf16 path mismatch vs reference"

    print("KERNEL_OK")
</pallas_src>

<mosaic_0001>
module attributes {stable_mosaic.version = 11 : i64} {
  func.func @_conv_prelu_kernel(%arg0: i32, %arg1: i32, %arg2: memref<1x8x8xf32, #tpu.memory_space<vmem>>, %arg3: memref<1x8x8xf32, #tpu.memory_space<vmem>>, %arg4: memref<8x128xf32, #tpu.memory_space<vmem>>, %arg5: memref<8x128xf32, #tpu.memory_space<vmem>>, %arg6: memref<1x128xf32, #tpu.memory_space<vmem>>, %arg7: memref<1x1xf32, #tpu.memory_space<smem>>, %arg8: memref<1x8x128xf32, #tpu.memory_space<vmem>>) attributes {dimension_semantics = [#tpu.dimension_semantics<parallel>, #tpu.dimension_semantics<parallel>], iteration_bounds = array<i64: 2, 1>, scalar_prefetch = 0 : i64, scratch_operands = 0 : i64, tpu.core_type = #tpu.core_type<tc>, window_params = [{transform_indices = @transform_0, window_bounds = array<i64: 1, 8, 8>}, {transform_indices = @transform_1, window_bounds = array<i64: 1, 8, 8>}, {pipeline_mode = #tpu.pipeline_mode<synchronous>, transform_indices = @transform_2, window_bounds = array<i64: 8, 128>}, {pipeline_mode = #tpu.pipeline_mode<synchronous>, transform_indices = @transform_3, window_bounds = array<i64: 8, 128>}, {pipeline_mode = #tpu.pipeline_mode<synchronous>, transform_indices = @transform_4, window_bounds = array<i64: 1, 128>}, {transform_indices = @transform_5, window_bounds = array<i64: 1, 1>}, {transform_indices = @transform_6, window_bounds = array<i64: 1, 8, 128>}]} {
    %c0 = arith.constant 0 : index
    %c0_0 = arith.constant 0 : index
    %c0_1 = arith.constant 0 : index
    %0 = vector.load %arg2[%c0, %c0_0, %c0_1] : memref<1x8x8xf32, #tpu.memory_space<vmem>>, vector<1x8x8xf32>
    %1 = vector.shape_cast %0 : vector<1x8x8xf32> to vector<8x8xf32>
    %c0_2 = arith.constant 0 : index
    %c0_3 = arith.constant 0 : index
    %2 = vector.load %arg4[%c0_2, %c0_3] : memref<8x128xf32, #tpu.memory_space<vmem>>, vector<8x128xf32>
    %cst = arith.constant dense<0.000000e+00> : vector<8x128xf32>
    %3 = tpu.matmul %1, %2, %cst {dimension_numbers = #tpu.dot_dimension_numbers<[1], [0], [0], [1], [0, 0, 1, 1], [], []>} : vector<8x8xf32>, vector<8x128xf32>, vector<8x128xf32> -> vector<8x128xf32>
    %c0_4 = arith.constant 0 : index
    %c0_5 = arith.constant 0 : index
    %c0_6 = arith.constant 0 : index
    %4 = vector.load %arg3[%c0_4, %c0_5, %c0_6] : memref<1x8x8xf32, #tpu.memory_space<vmem>>, vector<1x8x8xf32>
    %5 = vector.shape_cast %4 : vector<1x8x8xf32> to vector<8x8xf32>
    %c0_7 = arith.constant 0 : index
    %c0_8 = arith.constant 0 : index
    %6 = vector.load %arg5[%c0_7, %c0_8] : memref<8x128xf32, #tpu.memory_space<vmem>>, vector<8x128xf32>
    %cst_9 = arith.constant dense<0.000000e+00> : vector<8x128xf32>
    %7 = tpu.matmul %5, %6, %cst_9 {dimension_numbers = #tpu.dot_dimension_numbers<[1], [0], [0], [1], [0, 0, 1, 1], [], []>} : vector<8x8xf32>, vector<8x128xf32>, vector<8x128xf32> -> vector<8x128xf32>
    %8 = arith.addf %3, %7 : vector<8x128xf32>
    %c0_10 = arith.constant 0 : index
    %c0_11 = arith.constant 0 : index
    %9 = vector.load %arg6[%c0_10, %c0_11] : memref<1x128xf32, #tpu.memory_space<vmem>>, vector<1x128xf32>
    %10 = vector.broadcast %9 : vector<1x128xf32> to vector<8x128xf32>
    %11 = arith.addf %8, %10 : vector<8x128xf32>
    %c0_12 = arith.constant 0 : index
    %c0_13 = arith.constant 0 : index
    %12 = memref.load %arg7[%c0_12, %c0_13] : memref<1x1xf32, #tpu.memory_space<smem>>
    %cst_14 = arith.constant 0.000000e+00 : f32
    %13 = vector.broadcast %cst_14 : f32 to vector<8x128xf32>
    %14 = arith.cmpf ogt, %11, %13 : vector<8x128xf32>
    %15 = vector.broadcast %12 : f32 to vector<8x128xf32>
    %16 = arith.mulf %15, %11 : vector<8x128xf32>
    %17 = arith.select %14, %11, %16 : vector<8x128xi1>, vector<8x128xf32>
    %c0_15 = arith.constant 0 : index
    %c0_16 = arith.constant 0 : index
    %c0_17 = arith.constant 0 : index
    %18 = vector.load %arg8[%c0_15, %c0_16, %c0_17] : memref<1x8x128xf32, #tpu.memory_space<vmem>>, vector<1x8x128xf32>
    %19 = vector.shape_cast %18 : vector<1x8x128xf32> to vector<8x128xf32>
    %20 = vector.shape_cast %17 : vector<8x128xf32> to vector<1x8x128xf32>
    tpu.vector_store %arg8[%c0_15, %c0_16, %c0_17], %20 {strides = array<i32>} : memref<1x8x128xf32, #tpu.memory_space<vmem>>, vector<1x8x128xf32>,
    return
  }
  func.func @transform_0(%arg0: i32, %arg1: i32) -> (i32, i32, i32) {
    %c0_i32 = arith.constant 0 : i32
    %c0_i32_0 = arith.constant 0 : i32
    return %arg0, %arg1, %c0_i32 : i32, i32, i32
  }
  func.func @transform_1(%arg0: i32, %arg1: i32) -> (i32, i32, i32) {
    %c0_i32 = arith.constant 0 : i32
    %c0_i32_0 = arith.constant 0 : i32
    return %arg0, %arg1, %c0_i32 : i32, i32, i32
  }
  func.func @transform_2(%arg0: i32, %arg1: i32) -> (i32, i32) {
    %c0_i32 = arith.constant 0 : i32
    %c0_i32_0 = arith.constant 0 : i32
    %c0_i32_1 = arith.constant 0 : i32
    return %c0_i32, %c0_i32_0 : i32, i32
  }
  func.func @transform_3(%arg0: i32, %arg1: i32) -> (i32, i32) {
    %c0_i32 = arith.constant 0 : i32
    %c0_i32_0 = arith.constant 0 : i32
    %c0_i32_1 = arith.constant 0 : i32
    return %c0_i32, %c0_i32_0 : i32, i32
  }
  func.func @transform_4(%arg0: i32, %arg1: i32) -> (i32, i32) {
    %c0_i32 = arith.constant 0 : i32
    %c0_i32_0 = arith.constant 0 : i32
    %c0_i32_1 = arith.constant 0 : i32
    return %c0_i32, %c0_i32_0 : i32, i32
  }
  func.func @transform_5(%arg0: i32, %arg1: i32) -> (i32, i32) {
    %c0_i32 = arith.constant 0 : i32
    %c0_i32_0 = arith.constant 0 : i32
    %c0_i32_1 = arith.constant 0 : i32
    return %c0_i32, %c0_i32_0 : i32, i32
  }
  func.func @transform_6(%arg0: i32, %arg1: i32) -> (i32, i32, i32) {
    %c0_i32 = arith.constant 0 : i32
    %c0_i32_0 = arith.constant 0 : i32
    return %arg0, %arg1, %c0_i32 : i32, i32, i32
  }
}

</mosaic_0001>

<bundles_post_ra>
// kernel: downsample_layer.1
= control target key start
LH: loop header
LB: loop body
LE: loop exit
PB: predicated region body
PF: predicated region fallthrough
CT: control target
= control target key end

     0   :  { %s771_s0 = inlined_call_operand.vmem [shape: f32[2,9,8], index: 0, kind: input, shape index: {}]   ;;  %s772_s1 = inlined_call_operand.vmem [shape: f32[2,8,8], index: 1, kind: input, shape index: {}]   ;;  %s773_s2 = inlined_call_operand.vmem [shape: f32[8,128], index: 2, kind: input, shape index: {}]   ;;  %s774_s3 = inlined_call_operand.vmem [shape: f32[8,128], index: 3, kind: input, shape index: {}]   ;;  %s775_s4 = inlined_call_operand.vmem [shape: f32[1,128], index: 4, kind: input, shape index: {}]   ;;  %s776_s5 = inlined_call_operand.<no memory space> [shape: f32[1,1], index: 5, kind: input, shape index: {}]   ;;  %s777_s6 = inlined_call_operand.hbm [shape: f32[2,8,128], index: 6, kind: output, shape index: {}]  }
   0x1   :  { %11 = sst [smem:[#allocation2]] %s776_s5 }
   0x2   :  { %12 = vsyncpa [#allocation4], 0 }
   0x3   :  { %14 = vsyncpa [#allocation4 + $0x1], 0  ;;  %s662_s23 = smov 0   ;;  %s664_s24 = smov 0  }
   0x4   :  { %s666_s25 = smov 0   ;;  %s668_s26 = smov 0  }
   0x5   :  { %s670_s27 = smov 0   ;;  %s672_s28 = smov 0  }
   0x6 LB: > { %s472_s5 = sadd.s32 4294967295, %s622_s28   ;;  %s473_s29 = sadd.s32 4294967294, %s622_s28   ;;  %s622_s28 = sphi %s672_s28, %s20_s28   ;;  %s618_s27 = sphi %s670_s27, %s784_s27   ;;  %s614_s26 = sphi %s668_s26, %s783_s26   ;;  %s610_s25 = sphi %s666_s25, %s782_s25   ;;  %s606_s24 = sphi %s664_s24, %s781_s24   ;;  %s602_s23 = sphi %s662_s23, %s780_s23  }
   0x7   : > { %s32_s30 = sadd.s32 1, %s618_s27  ;;  %s181_s7 = sadd.s32 1, %s610_s25 }
   0x8   : > { %p34_p0 = scmp.ge.s32.totalorder %s32_s30, 2  ;;  %p191_p1 = scmp.ne.s32.totalorder %s610_s25, %s606_s24 }
   0x9   : > { %p192_p2 = scmp.eq.s32.totalorder %s472_s5, 1  ;;  %p197_p3 = scmp.ne.s32.totalorder %s606_s24, %s602_s23 }
   0xa   : > { %s786_s30 = smov (%p34_p0, %s32_s30), 0  ;;  %p198_p5 = scmp.eq.s32.totalorder %s473_s29, 1 }
   0xb   : > { %p702_p4 = por %p192_p2, %p191_p1  ;;  %s176_s9 = ssub.s32 %s618_s27, %s786_s30 }
   0xc   : > { %p476_p6 = scmp.ge.s32.totalorder %s622_s28, 1  ;;  %p179_p7 = scmp.eq.s32.totalorder %s176_s9, 0 }
   0xd   : > { %p709_p8 = por %p198_p5, %p197_p3  ;;  %p249_p9 = scmp.lt.s32.totalorder %s622_s28, 3 }
   0xe   : > { %s715_s11 = scalar_select %p179_p7, %s610_s25, %s181_s7  }
   0xf   : > { %p250_p10 = pnand %p476_p6, %p249_p9 }
  0x10   : > { %p289_p11 = scmp.lt.s32.totalorder (!%p250_p10), %s614_s26, 1  ;;  %s360_s7 = sld [smem:[#allocation2]] (!%p250_p10) }
  0x11   : > { %253 = sbr.rel (%p250_p10) target bundleno = 164 (0xa4), region = 44  ;;  %s286_s9 = sand.u32 (!%p250_p10), 1, %s606_s24  }
  0x12   : > { %s477_s12 = sshll.u32 (!%p250_p10), %s286_s9, 3  ;;  %s484_s13 = sshll.u32 (!%p250_p10), %s614_s26, 3 }
  0x13   : > { %s378_s19 = scalar_lea.hbm (!%p250_p10), %s777_s6, %s484_s13 }
  0x16   : > { %v307_v0 = vld [vmem:[%s774_s3] sm:$0xff]  ;;  %s290_s16 = scalar_select %p289_p11, %s614_s26, 1  ;;  %vm308_vm0 = vcmask 64512   ;;  %v362_v8 = vstv %s360_s7 }
  0x17   : > { %v305_v1 = vld [vmem:[%s773_s2] sm:$0xff]  ;;  %327 = vmatpush.msra.mxu0 %v307_v0  ;;  %s367_s26 = scalar_lea.sflag [#allocation4], %s286_s9 }
  0x18   : > { %350 = vmatpush.msra.mxu1 %v305_v1  ;;  %s480_s17 = sshll.u32 %s290_s16, 3  ;;  %s487_s18 = sshll.u32 %s290_s16, 4  ;;  %v543_v4 = vld [vmem:[%s775_s4] ss:$0 sm:$0xff] }
  0x19   : > { %s303_s21 = scalar_lea.vmem %s772_s1, %s480_s17  ;;  %s296_s29 = scalar_lea.vmem %s771_s0, %s487_s18 }
  0x1a   : > { %v306_v2 = vld [vmem:[%s303_s21] sm:$0xff]  ;;  %s288_s18 = scalar_lea.vmem [#allocation3], %s477_s12  ;;  %s382_s21 = sshll.u32 %s378_s19, 4  ;;  %s383_s21 = int_to_ptr.hbm [resolvable:$true] %s382_s21 }
  0x1b   : > { %v304_v3 = vld [vmem:[%s296_s29] sm:$0xff]  ;;  %481 = vmatmul.msk.f32.vlgmr.msra.gmra.mxu0 %vm308_vm0, %v306_v2  ;;  %s380_s20 = sshll.u32 %s288_s18, 4  ;;  %s558_s22 = sshra.s32 %s383_s21, 4  ;;  %s381_s20 = int_to_ptr.vmem [resolvable:$true] %s380_s20  ;;  %s559_s22 = int_to_ptr.hbm [resolvable:$true] %s558_s22 }
  0x1c   : > { %482 = vmatmul.msk.f32.vlgmr.msra.gmra.mxu1 %vm308_vm0, %v304_v3  ;;  %s560_s5 = scalar_lea.hbm %s559_s22, 8  ;;  %s564_s12 = scalar_lea.hbm %s777_s6, 16 }
  0x1d   : > { %p561_p12 = scmp.ne.s32.totalorder %s559_s22, %s560_s5  ;;  %p565_p1 = scmp.lt.s32.totalorder %s559_s22, %s777_s6 }
  0x1e   : > { %p566_p2 = scmp.lt.s32.totalorder %s564_s12, %s560_s5 }
  0x1f   : > { %p562_p13 = pnand %p561_p12, %p702_p4 }
  0x20   : > { %p567_p3 = por %p566_p2, %p565_p1 }
  0x21   : > { %p563_p0 = pneg %p562_p13 }
  0x23   : > { %p568_p5 = pnand %p567_p3, %p563_p0 }
  0x98   : > { %v329_v5 = vpop.f32.mrf.mxu0 }
  0x99   : > { %v352_v6 = vpop.f32.mrf.mxu1 }
  0x9a   : > { %v353_v7 = vadd.f32 %v352_v6, %v329_v5 }
  0x9c   : > { %v359_v9 = vadd.f32 %v543_v4, %v353_v7 }
  0x9e   : > { %v363_v10 = vmul.f32 %v362_v8, %v359_v9  ;;  %vm361_vm1 = vcmp.gt.f32.partialorder %v359_v9, 0.0 }
  0xa0   : > { %v364_v11 = vsel %vm361_vm1, %v359_v9, %v363_v10 }
  0xa1   : > { %365 = vst [vmem:[%s288_s18] sm:$0xff] %v364_v11 }
  0xa2   : > { %571 = shalt.err (!%p568_p5)
}
  0xa3   : > { %488 = dma.vmem_to_hbm [thread:$0]  (%p702_p4), %s381_s20, 128, %s383_s21, %s367_s26  }
  0xa4 PF: > { %p494_p6 = scmp.ge.s32.totalorder %s622_s28, 2  ;;  %s394_s9 = sand.u32 1, %s602_s23  }
  0xa5   : > { %s395_s15 = scalar_lea.sflag [#allocation4], %s394_s9 }
  0xa6   : > { %p491_p7 = pnand %p494_p6, %p709_p8 }
  0xa8   : > { %p492_p9 = pneg %p491_p7 }
  0xaa   : > { %597 = dma.done.wait (%p492_p9), %s395_s15, 128  }
  0xab   : > { %599 = vsyncadd (%p492_p9), %s395_s15, 4294967168  ;;  %s20_s28 = sadd.s32 1, %s622_s28   ;;  %s780_s23 = smov %s606_s24 }
  0xac   : > { %p17_p10 = scmp.ge.s32.totalorder %s20_s28, 4   ;;  %s781_s24 = smov %s610_s25 }
  0xad   : > { %s782_s25 = smov %s715_s11  ;;  %s783_s26 = smov %s618_s27 }
  0xae   : > { %s784_s27 = smov %s786_s30  ;;  %19 = sbr.rel (!%p17_p10) target bundleno = 6 (0x6), region = 82 }
  0xb3   :  { %401 = vsyncpa [#allocation4], 1 }
  0xb4   :  { %403 = vsyncpa [#allocation4 + $0x1], 1 }

</bundles_post_ra>
